<compile_context>
chip_gen: v5e
topology: v5e:2x2
jax: 0.10.0
libtpu: 0.0.40
codegen_flags: <defaults>
</compile_context>

<pallas_src>
import jax
import jax.numpy as jnp
from jax.experimental import pallas as pl
from jax.experimental.pallas import tpu as pltpu

INPUT_SIZE = 10
HIDDEN_SIZE = 20
OUTPUT_SIZE = 2

LANE = 128                    # TPU lane width
HID_PAD = 128                 # hidden dim padded to one lane group
OUT_PAD = 128                 # padded output width used *inside* the kernel only
TB_MAX = 2048                 # max batch-tile rows (multiple of 8)
VMEM_LIMIT_BYTES = 32 * 1024 * 1024   # fits v5e/v6e/v7x; >> actual footprint


def _cdiv(a, b):
    return (a + b - 1) // b


def _round_up(x, m):
    return ((x + m - 1) // m) * m


def _mlp_kernel(x_ref, w1_ref, b1_ref, w2_ref, b2_ref, o_ref):
    # Whole tile forward pass in VMEM: two MXU matmuls + VPU bias/relu.
    x = x_ref[...]                                                     # (TB, 10)
    h = jnp.dot(x, w1_ref[...], preferred_element_type=jnp.float32)    # (TB, 128)
    h = jnp.maximum(h + b1_ref[...], 0.0)
    y = jnp.dot(h, w2_ref[...], preferred_element_type=jnp.float32)    # (TB, 128)
    y = y + b2_ref[...]
    # Narrow store: only the OUTPUT_SIZE useful lanes go back to HBM.
    o_ref[...] = y[:, :OUTPUT_SIZE].astype(o_ref.dtype)                # (TB, 2)


def prepare_params(w1, b1, w2, b2):
    """Zero-pad weights/biases to lane-friendly widths ONCE (math unchanged).

    Weights are stored transposed vs. PyTorch: shape (in, out), so the kernel
    computes x @ W + b (identical to x @ W_pt.T + b).
    """
    w1p = jnp.pad(w1, ((0, 0), (0, HID_PAD - HIDDEN_SIZE)))      # (10, 128)
    b1p = jnp.pad(b1, ((0, 0), (0, HID_PAD - HIDDEN_SIZE)))      # (1, 128)
    w2p = jnp.pad(w2, ((0, HID_PAD - HIDDEN_SIZE),
                       (0, OUT_PAD - OUTPUT_SIZE)))               # (128, 128)
    b2p = jnp.pad(b2, ((0, 0), (0, OUT_PAD - OUTPUT_SIZE)))      # (1, 128)
    return w1p, b1p, w2p, b2p


def _tiling(B):
    """Pick (TB, B_pad, n_tiles) with bounded padding waste and >=2 tiles
    for mid-size batches (keeps both v7x TensorCores busy)."""
    bp8 = _round_up(max(B, 1), 8)
    n_tiles = _cdiv(bp8, TB_MAX)
    if bp8 >= 16:
        n_tiles = max(n_tiles, 2)
    tb = _round_up(_cdiv(bp8, n_tiles), 8)
    return tb, n_tiles * tb, n_tiles


def simple_dense_net(x, w1p, b1p, w2p, b2p):
    """x: [B, INPUT_SIZE] f32 -> [B, OUTPUT_SIZE] f32. Params must be padded
    via prepare_params()."""
    B = x.shape[0]
    TB, B_pad, n_tiles = _tiling(B)

    # Zero-pad batch rows (kept explicit so no garbage rows ever enter the
    # matmuls); padded rows are sliced off at the end.
    if B_pad != B:
        x = jnp.pad(x, ((0, B_pad - B), (0, 0)))

    flops = 2 * B_pad * (INPUT_SIZE * HID_PAD + HID_PAD * OUT_PAD)
    bytes_accessed = 4 * (B_pad * INPUT_SIZE                 # x read
                          + B_pad * OUTPUT_SIZE              # narrow output write
                          + INPUT_SIZE * HID_PAD + HID_PAD   # w1, b1
                          + HID_PAD * OUT_PAD + OUT_PAD)     # w2, b2

    out = pl.pallas_call(
        _mlp_kernel,
        out_shape=jax.ShapeDtypeStruct((B_pad, OUTPUT_SIZE), jnp.float32),
        grid=(n_tiles,),
        in_specs=[
            pl.BlockSpec((TB, INPUT_SIZE), lambda i: (i, 0)),       # x: batch-tiled
            pl.BlockSpec((INPUT_SIZE, HID_PAD), lambda i: (0, 0)),  # w1: VMEM-resident
            pl.BlockSpec((1, HID_PAD), lambda i: (0, 0)),           # b1
            pl.BlockSpec((HID_PAD, OUT_PAD), lambda i: (0, 0)),     # w2
            pl.BlockSpec((1, OUT_PAD), lambda i: (0, 0)),           # b2
        ],
        out_specs=pl.BlockSpec((TB, OUTPUT_SIZE), lambda i: (i, 0)),
        compiler_params=pltpu.CompilerParams(
            dimension_semantics=("parallel",),
            vmem_limit_bytes=VMEM_LIMIT_BYTES),
        cost_estimate=pl.CostEstimate(
            flops=flops, transcendentals=0, bytes_accessed=bytes_accessed),
    )(x, w1p, b1p, w2p, b2p)

    # Drop only the padded rows; output lanes are already narrow.
    return out[:B]


def init_params(key):
    # Deterministic init mimicking nn.Linear's U(-1/sqrt(fan_in), 1/sqrt(fan_in)).
    k1, k2, k3, k4 = jax.random.split(key, 4)
    lim1 = 1.0 / jnp.sqrt(jnp.float32(INPUT_SIZE))
    lim2 = 1.0 / jnp.sqrt(jnp.float32(HIDDEN_SIZE))
    w1 = jax.random.uniform(k1, (INPUT_SIZE, HIDDEN_SIZE), jnp.float32, -lim1, lim1)
    b1 = jax.random.uniform(k2, (1, HIDDEN_SIZE), jnp.float32, -lim1, lim1)
    w2 = jax.random.uniform(k3, (HIDDEN_SIZE, OUTPUT_SIZE), jnp.float32, -lim2, lim2)
    b2 = jax.random.uniform(k4, (1, OUTPUT_SIZE), jnp.float32, -lim2, lim2)
    return w1, b1, w2, b2


def _ref_forward(x, w1, b1, w2, b2):
    return jnp.maximum(x @ w1 + b1, 0.0) @ w2 + b2


if __name__ == "__main__":
    key = jax.random.PRNGKey(0)
    kx, kp = jax.random.split(key)
    w1, b1, w2, b2 = init_params(kp)
    padded = prepare_params(w1, b1, w2, b2)   # pad once, reuse every call

    # Primary small-shape run (single tile).
    batch = 8
    x = jax.random.normal(kx, (batch, INPUT_SIZE), jnp.float32)
    out = jax.block_until_ready(simple_dense_net(x, *padded))
    ref = _ref_forward(x, w1, b1, w2, b2)
    assert out.shape == (batch, OUTPUT_SIZE)
    assert jnp.allclose(out, ref, atol=1e-5, rtol=1e-5)

    # Batch-padding path (B not a multiple of 8) + forced 2-tile grid.
    batch2 = 10
    x2 = jax.random.normal(jax.random.PRNGKey(1), (batch2, INPUT_SIZE), jnp.float32)
    out2 = jax.block_until_ready(simple_dense_net(x2, *padded))
    ref2 = _ref_forward(x2, w1, b1, w2, b2)
    assert out2.shape == (batch2, OUTPUT_SIZE)
    assert jnp.allclose(out2, ref2, atol=1e-5, rtol=1e-5)

    # Multi-tile even-split path.
    batch3 = 20
    x3 = jax.random.normal(jax.random.PRNGKey(2), (batch3, INPUT_SIZE), jnp.float32)
    out3 = jax.block_until_ready(simple_dense_net(x3, *padded))
    ref3 = _ref_forward(x3, w1, b1, w2, b2)
    assert out3.shape == (batch3, OUTPUT_SIZE)
    assert jnp.allclose(out3, ref3, atol=1e-5, rtol=1e-5)

    print("KERNEL_OK")
</pallas_src>

<mosaic_0001>
module attributes {stable_mosaic.version = 11 : i64} {
  func.func @_mlp_kernel(%arg0: i32, %arg1: memref<8x10xf32, #tpu.memory_space<vmem>>, %arg2: memref<10x128xf32, #tpu.memory_space<vmem>>, %arg3: memref<1x128xf32, #tpu.memory_space<vmem>>, %arg4: memref<128x128xf32, #tpu.memory_space<vmem>>, %arg5: memref<1x128xf32, #tpu.memory_space<vmem>>, %arg6: memref<8x2xf32, #tpu.memory_space<vmem>>) attributes {dimension_semantics = [#tpu.dimension_semantics<parallel>], iteration_bounds = array<i64: 1>, scalar_prefetch = 0 : i64, scratch_operands = 0 : i64, tpu.core_type = #tpu.core_type<tc>, window_params = [{transform_indices = @transform_0, window_bounds = array<i64: 8, 10>}, {pipeline_mode = #tpu.pipeline_mode<synchronous>, transform_indices = @transform_1, window_bounds = array<i64: 10, 128>}, {pipeline_mode = #tpu.pipeline_mode<synchronous>, transform_indices = @transform_2, window_bounds = array<i64: 1, 128>}, {pipeline_mode = #tpu.pipeline_mode<synchronous>, transform_indices = @transform_3, window_bounds = array<i64: 128, 128>}, {pipeline_mode = #tpu.pipeline_mode<synchronous>, transform_indices = @transform_4, window_bounds = array<i64: 1, 128>}, {transform_indices = @transform_5, window_bounds = array<i64: 8, 2>}]} {
    %c0 = arith.constant 0 : index
    %c0_0 = arith.constant 0 : index
    %0 = vector.load %arg1[%c0, %c0_0] : memref<8x10xf32, #tpu.memory_space<vmem>>, vector<8x10xf32>
    %c0_1 = arith.constant 0 : index
    %c0_2 = arith.constant 0 : index
    %1 = vector.load %arg2[%c0_1, %c0_2] : memref<10x128xf32, #tpu.memory_space<vmem>>, vector<10x128xf32>
    %cst = arith.constant dense<0.000000e+00> : vector<8x128xf32>
    %2 = tpu.matmul %0, %1, %cst {dimension_numbers = #tpu.dot_dimension_numbers<[1], [0], [0], [1], [0, 0, 1, 1], [], []>} : vector<8x10xf32>, vector<10x128xf32>, vector<8x128xf32> -> vector<8x128xf32>
    %c0_3 = arith.constant 0 : index
    %c0_4 = arith.constant 0 : index
    %3 = vector.load %arg3[%c0_3, %c0_4] : memref<1x128xf32, #tpu.memory_space<vmem>>, vector<1x128xf32>
    %4 = vector.broadcast %3 : vector<1x128xf32> to vector<8x128xf32>
    %5 = arith.addf %2, %4 : vector<8x128xf32>
    %cst_5 = arith.constant 0.000000e+00 : f32
    %6 = vector.broadcast %cst_5 : f32 to vector<8x128xf32>
    %7 = arith.maximumf %5, %6 : vector<8x128xf32>
    %c0_6 = arith.constant 0 : index
    %c0_7 = arith.constant 0 : index
    %8 = vector.load %arg4[%c0_6, %c0_7] : memref<128x128xf32, #tpu.memory_space<vmem>>, vector<128x128xf32>
    %cst_8 = arith.constant dense<0.000000e+00> : vector<8x128xf32>
    %9 = tpu.matmul %7, %8, %cst_8 {dimension_numbers = #tpu.dot_dimension_numbers<[1], [0], [0], [1], [0, 0, 1, 1], [], []>} : vector<8x128xf32>, vector<128x128xf32>, vector<8x128xf32> -> vector<8x128xf32>
    %c0_9 = arith.constant 0 : index
    %c0_10 = arith.constant 0 : index
    %10 = vector.load %arg5[%c0_9, %c0_10] : memref<1x128xf32, #tpu.memory_space<vmem>>, vector<1x128xf32>
    %11 = vector.broadcast %10 : vector<1x128xf32> to vector<8x128xf32>
    %12 = arith.addf %9, %11 : vector<8x128xf32>
    %13 = vector.extract_strided_slice %12 {offsets = [0, 0], sizes = [8, 2], strides = [1, 1]} : vector<8x128xf32> to vector<8x2xf32>
    %c0_11 = arith.constant 0 : index
    %c0_12 = arith.constant 0 : index
    %14 = vector.load %arg6[%c0_11, %c0_12] : memref<8x2xf32, #tpu.memory_space<vmem>>, vector<8x2xf32>
    tpu.vector_store %arg6[%c0_11, %c0_12], %13 {strides = array<i32>} : memref<8x2xf32, #tpu.memory_space<vmem>>, vector<8x2xf32>,
    return
  }
  func.func @transform_0(%arg0: i32) -> (i32, i32) {
    %c0_i32 = arith.constant 0 : i32
    %c0_i32_0 = arith.constant 0 : i32
    return %arg0, %c0_i32 : i32, i32
  }
  func.func @transform_1(%arg0: i32) -> (i32, i32) {
    %c0_i32 = arith.constant 0 : i32
    %c0_i32_0 = arith.constant 0 : i32
    %c0_i32_1 = arith.constant 0 : i32
    return %c0_i32, %c0_i32_0 : i32, i32
  }
  func.func @transform_2(%arg0: i32) -> (i32, i32) {
    %c0_i32 = arith.constant 0 : i32
    %c0_i32_0 = arith.constant 0 : i32
    %c0_i32_1 = arith.constant 0 : i32
    return %c0_i32, %c0_i32_0 : i32, i32
  }
  func.func @transform_3(%arg0: i32) -> (i32, i32) {
    %c0_i32 = arith.constant 0 : i32
    %c0_i32_0 = arith.constant 0 : i32
    %c0_i32_1 = arith.constant 0 : i32
    return %c0_i32, %c0_i32_0 : i32, i32
  }
  func.func @transform_4(%arg0: i32) -> (i32, i32) {
    %c0_i32 = arith.constant 0 : i32
    %c0_i32_0 = arith.constant 0 : i32
    %c0_i32_1 = arith.constant 0 : i32
    return %c0_i32, %c0_i32_0 : i32, i32
  }
  func.func @transform_5(%arg0: i32) -> (i32, i32) {
    %c0_i32 = arith.constant 0 : i32
    %c0_i32_0 = arith.constant 0 : i32
    return %arg0, %c0_i32 : i32, i32
  }
}

</mosaic_0001>

<bundles_post_ra>
// kernel: tpu_custom_call.1
= control target key start
LH: loop header
LB: loop body
LE: loop exit
PB: predicated region body
PF: predicated region fallthrough
CT: control target
= control target key end

     0   :  { %10 = vsyncpa [#allocation3], 0  ;;  %s287_s0 = inlined_call_operand.hbm [shape: f32[8,10], index: 0, kind: input, shape index: {}]   ;;  %s288_s1 = inlined_call_operand.hbm [shape: f32[10,128], index: 1, kind: input, shape index: {}]   ;;  %s289_s2 = inlined_call_operand.vmem [shape: f32[1,128], index: 2, kind: input, shape index: {}]   ;;  %s290_s3 = inlined_call_operand.hbm [shape: f32[128,128], index: 3, kind: input, shape index: {}]   ;;  %s291_s4 = inlined_call_operand.vmem [shape: f32[1,128], index: 4, kind: input, shape index: {}]   ;;  %s292_s5 = inlined_call_operand.vmem [shape: f32[8,2], index: 5, kind: output, shape index: {}]  }
   0x1   :  { %11 = vsyncpa [#allocation5], 0  ;;  %s27_s20 = sshll.u32 %s288_s1, 4  ;;  %s234_s21 = smov [#allocation4]   ;;  %s28_s20 = int_to_ptr.hbm [resolvable:$true] %s27_s20 }
   0x2   :  { %s29_s22 = sshll.u32 %s234_s21, 4  ;;  %s17_s25 = sshll.u32 %s287_s0, 4  ;;  %s30_s22 = int_to_ptr.vmem [resolvable:$true] %s29_s22  ;;  %s18_s25 = int_to_ptr.hbm [resolvable:$true] %s17_s25 }
   0x3   :  { %s235_s26 = smov 128   ;;  %s236_s27 = smov 8  }
   0x4   :  { %35 = dma.hbm_to_vmem [thread:$0]  %s28_s20, 256, %s30_s22, [#allocation5], %s235_s26, %s235_s26, %s236_s27  }
   0x5   :  { %s237_s28 = smov [#allocation2]   ;;  %s42_s7 = sshll.u32 %s290_s3, 4  ;;  %s43_s7 = int_to_ptr.hbm [resolvable:$true] %s42_s7 }
   0x6   :  { %s19_s29 = sshll.u32 %s237_s28, 4  ;;  %s238_s1 = smov [#allocation6]   ;;  %s20_s29 = int_to_ptr.vmem [resolvable:$true] %s19_s29 }
   0x7   :  { %22 = dma.hbm_to_vmem [thread:$0]  %s18_s25, 128, %s20_s29, [#allocation3]  }
   0x8   :  { %s44_s8 = sshll.u32 %s238_s1, 4  ;;  %s45_s8 = int_to_ptr.vmem [resolvable:$true] %s44_s8 }
   0x9   :  { %50 = dma.hbm_to_vmem [thread:$0]  %s43_s7, 2048, %s45_s8, [#allocation5], %s235_s26, %s235_s26, %s236_s27  }
   0xa   :  { %230 = dma.done.wait [#allocation3], 128  }
   0xb   :  { %231 = vsyncadd [#allocation3], 4294967168 }
   0xc   :  { %232 = dma.done.wait [#allocation5], 2304  }
   0xd   :  { %233 = vsyncadd [#allocation5], 4294964992  ;;  %vm76_vm0 = vcmask 1041408   ;;  %v67_v0 = vld [vmem:[#allocation4 + $0x8] sm:$0x3]  ;;  %v66_v1 = vld [vmem:[#allocation4] sm:$0xff] }
   0xe   :  { %149 = vmatpush.msk.msra.mxu0 %vm76_vm0, %v67_v0  ;;  %v65_v2 = vld [vmem:[#allocation2] sm:$0xff]  ;;  %vm72_vm1 = vcmask 80896   ;;  %v116_v3 = vld [vmem:[#allocation6 + $0x78] sm:$0xff]  ;;  %v115_v4 = vld [vmem:[#allocation6 + $0x70] sm:$0xff]  ;;  %vm141_vm2 = vcmask 15360  }
   0xf   :  { %121 = vmatpush.msra.mxu1 %v116_v3  ;;  %v114_v5 = vld [vmem:[#allocation6 + $0x68] sm:$0xff]  ;;  %v113_v6 = vld [vmem:[#allocation6 + $0x60] sm:$0xff]  ;;  %v112_v7 = vld [vmem:[#allocation6 + $0x58] sm:$0xff] }
  0x10   :  { %95 = vmatpush.msra.mxu0 %v66_v1  ;;  %v111_v8 = vld [vmem:[#allocation6 + $0x50] sm:$0xff]  ;;  %v110_v9 = vld [vmem:[#allocation6 + $0x48] sm:$0xff]  ;;  %v109_v10 = vld [vmem:[#allocation6 + $0x40] sm:$0xff] }
  0x11   :  { %150 = vmatmul.msk.f32.vlgmr.msra.gmra.mxu0 %vm72_vm1, %v65_v2  ;;  %122 = vmatpush.msra.mxu1 %v115_v4  ;;  %v108_v11 = vld [vmem:[#allocation6 + $0x38] sm:$0xff]  ;;  %v107_v12 = vld [vmem:[#allocation6 + $0x30] sm:$0xff]  ;;  %v106_v13 = vld [vmem:[#allocation6 + $0x28] sm:$0xff] }
  0x12   :  { %v105_v14 = vld [vmem:[#allocation6 + $0x20] sm:$0xff]  ;;  %v104_v15 = vld [vmem:[#allocation6 + $0x18] sm:$0xff]  ;;  %v103_v16 = vld [vmem:[#allocation6 + $0x10] sm:$0xff] }
  0x13   :  { %123 = vmatpush.msra.mxu1 %v114_v5  ;;  %v102_v17 = vld [vmem:[#allocation6 + $0x8] sm:$0xff]  ;;  %v101_v18 = vld [vmem:[#allocation6] sm:$0xff] }
  0x14   :  { %v156_v19 = vld [vmem:[%s289_s2] ss:$0 sm:$0xff] }
  0x15   :  { %124 = vmatpush.msra.mxu1 %v113_v6  ;;  %v157_v23 = vld [vmem:[%s291_s4] ss:$0 sm:$0xff] }
  0x17   :  { %125 = vmatpush.msra.mxu1 %v112_v7 }
  0x19   :  { %126 = vmatpush.msra.mxu1 %v111_v8 }
  0x1b   :  { %127 = vmatpush.msra.mxu1 %v110_v9 }
  0x1d   :  { %128 = vmatpush.msra.mxu1 %v109_v10 }
  0x1f   :  { %129 = vmatpush.msra.mxu1 %v108_v11 }
  0x21   :  { %130 = vmatpush.msra.mxu1 %v107_v12 }
  0x23   :  { %131 = vmatpush.msra.mxu1 %v106_v13 }
  0x25   :  { %132 = vmatpush.msra.mxu1 %v105_v14 }
  0x27   :  { %133 = vmatpush.msra.mxu1 %v104_v15 }
  0x29   :  { %134 = vmatpush.msra.mxu1 %v103_v16 }
  0x2b   :  { %135 = vmatpush.msra.mxu1 %v102_v17 }
  0x2d   :  { %136 = vmatpush.msra.mxu1 %v101_v18 }
  0x8e   :  { %v97_v20 = vpop.f32.mrf.mxu0 }
  0x8f   :  { %v98_v21 = vadd.f32 %v156_v19, %v97_v20 }
  0x91   :  { %v100_v22 = vmax.f32 %v98_v21, 0.0 }
  0x93   :  { %137 = vmatmul.f32.vlgmr.msra.gmra.mxu1 %v100_v22 }
 0x110   :  { %v138_v24 = vpop.f32.mrf.mxu1 }
 0x111   :  { %v139_v25 = vadd.f32 %v157_v23, %v138_v24 }
 0x113   :  { %142 = vst.msk [vmem:[%s292_s5] sm:$0xff] %vm141_vm2, %v139_v25 }
 0x114   :  { %147 = vsyncpa [#allocation3], 1 }
 0x115   :  { %148 = vsyncpa [#allocation5], 1 }

</bundles_post_ra>
